<compile_context>
chip_gen: v6e
topology: v6e:2x2x1
jax: 0.10.0
libtpu: 0.0.40
codegen_flags: <defaults>
</compile_context>

<pallas_src>
import jax
import jax.numpy as jnp
from jax.experimental import pallas as pl
from jax.experimental.pallas import tpu as pltpu


def _round_up(x: int, m: int) -> int:
    return (x + m - 1) // m * m


def _lora_linear_kernel(x_ref, wt_ref, xa_ref, b_ref, bb_ref, o_ref, acc_ref):
    """Produces one (tm, tn) output tile; K (= d_in) is the reduction axis."""
    k = pl.program_id(2)

    @pl.when(k == 0)
    def _init():
        acc_ref[...] = jnp.zeros_like(acc_ref)

    # Base linear: accumulate x_tile @ (W^T)_tile over the K axis.
    acc_ref[...] += jnp.dot(x_ref[...], wt_ref[...],
                            preferred_element_type=jnp.float32)

    @pl.when(k == pl.num_programs(2) - 1)
    def _finalize():
        # LoRA second matmul: xa = x @ (A * alpha/rank) was precomputed in the
        # wrapper, so this is one tiny (tm, r) x (r, tn) pass per output tile.
        z = acc_ref[...] + b_ref[...]
        z = z + jnp.dot(xa_ref[...], bb_ref[...],
                        preferred_element_type=jnp.float32)
        o_ref[...] = z.astype(o_ref.dtype)


def prepare_lora_linear(W, b, A, B, alpha, rank, *, tn=256, tk=2048):
    """One-time parameter prep (hoisted out of the per-call path).

    W: (d_out, d_in) nn.Linear weight; b: (d_out,); A: (d_in, r); B: (r, d_out).
    """
    d_out, d_in = W.shape
    r = A.shape[1]
    scale = float(alpha) / float(rank)

    Wt = jnp.asarray(W).T                                   # (d_in, d_out), once
    A_scaled = (jnp.asarray(A) * scale).astype(A.dtype)     # fold alpha/rank
    b2 = jnp.asarray(b).reshape(1, d_out).astype(jnp.float32)
    Bf = jnp.asarray(B).astype(jnp.float32)                 # (r, d_out), tiny

    # Lane-dense output tiling along d_out.
    tn = min(int(tn), _round_up(d_out, 128))
    N_pad = _round_up(d_out, tn)

    # K (d_in) tiling: one full-width step when d_in fits in a single tile,
    # otherwise multiple-of-128 tiles with zero padding of the contraction dim.
    if d_in <= tk:
        tk_eff = d_in
        K_pad = d_in
    else:
        tk_eff = _round_up(min(int(tk), d_in), 128)
        K_pad = _round_up(d_in, tk_eff)

    if N_pad != d_out:
        Wt = jnp.pad(Wt, ((0, 0), (0, N_pad - d_out)))
        b2 = jnp.pad(b2, ((0, 0), (0, N_pad - d_out)))
        Bf = jnp.pad(Bf, ((0, 0), (0, N_pad - d_out)))
    if K_pad != d_in:
        Wt = jnp.pad(Wt, ((0, K_pad - d_in), (0, 0)))

    return dict(Wt=Wt, b2=b2, A_scaled=A_scaled, B=Bf,
                d_in=d_in, d_out=d_out, r=r,
                N_pad=N_pad, K_pad=K_pad, tn=tn, tk=tk_eff)


def lora_linear_apply(x, params, *, tm=512):
    p = params
    d_in, d_out = p["d_in"], p["d_out"]
    N_pad, K_pad, tn, tk, r = p["N_pad"], p["K_pad"], p["tn"], p["tk"], p["r"]

    orig_shape = x.shape
    assert orig_shape[-1] == d_in, "last dim of x must be d_in"
    dtype = x.dtype
    itemsize = jnp.dtype(dtype).itemsize

    x2 = x.reshape(-1, d_in)
    M = x2.shape[0]

    # Hoisted LoRA first matmul: one tiny (M, r) product, outside the grid.
    xa = jnp.dot(x2, p["A_scaled"], preferred_element_type=jnp.float32)

    # tm rounded to the dtype's sublane packing (8 f32 / 16 bf16 / 32 int8).
    row_align = 8 * max(1, 4 // itemsize)
    tm = max(row_align,
             min(_round_up(int(tm), row_align), _round_up(M, row_align)))
    M_pad = _round_up(M, tm)

    if M_pad != M:
        x2 = jnp.pad(x2, ((0, M_pad - M), (0, 0)))
        xa = jnp.pad(xa, ((0, M_pad - M), (0, 0)))
    if K_pad != d_in:
        x2 = jnp.pad(x2, ((0, 0), (0, K_pad - d_in)))

    grid = (M_pad // tm, N_pad // tn, K_pad // tk)

    # VMEM footprint: double-buffered tiles with real lane/sublane padding plus
    # the f32 accumulator; clamp <= 48 MiB so v7x (64 MiB/TC) keeps headroom.
    r_lanes = _round_up(r, 128)
    r_sub = _round_up(r, 8)
    vmem_bytes = (2 * (tm * tk * itemsize        # x tile
                       + tk * tn * itemsize      # W^T tile
                       + tm * r_lanes * 4        # xa tile (f32, r padded to 128)
                       + 8 * tn * 4              # bias tile (sublane-padded)
                       + r_sub * tn * 4          # B tile
                       + tm * tn * itemsize)     # output tile
                  + tm * tn * 4                  # accumulator scratch
                  + (4 << 20))                   # compiler slack
    vmem_bytes = int(min(max(vmem_bytes, 32 << 20), 48 << 20))

    flops = 2 * M_pad * K_pad * N_pad + 2 * M_pad * r * N_pad
    bytes_accessed = (x2.size * (N_pad // tn)          # x re-streamed per N tile
                      + p["Wt"].size * (M_pad // tm)   # W^T re-streamed per M tile
                      + xa.size + p["B"].size + p["b2"].size
                      + M_pad * N_pad) * itemsize

    out = pl.pallas_call(
        _lora_linear_kernel,
        out_shape=jax.ShapeDtypeStruct((M_pad, N_pad), dtype),
        grid_spec=pltpu.PrefetchScalarGridSpec(
            num_scalar_prefetch=0,
            grid=grid,
            in_specs=[
                pl.BlockSpec((tm, tk), lambda i, j, k: (i, k)),   # x tile
                pl.BlockSpec((tk, tn), lambda i, j, k: (k, j)),   # W^T tile
                pl.BlockSpec((tm, r), lambda i, j, k: (i, 0)),    # xa = x @ A*scale
                pl.BlockSpec((1, tn), lambda i, j, k: (0, j)),    # bias
                pl.BlockSpec((r, tn), lambda i, j, k: (0, j)),    # LoRA B
            ],
            out_specs=pl.BlockSpec((tm, tn), lambda i, j, k: (i, j)),
            scratch_shapes=[pltpu.VMEM((tm, tn), jnp.float32)],
        ),
        compiler_params=pltpu.CompilerParams(
            dimension_semantics=("parallel", "parallel", "arbitrary"),
            vmem_limit_bytes=vmem_bytes),
        cost_estimate=pl.CostEstimate(
            flops=int(flops), transcendentals=0,
            bytes_accessed=int(bytes_accessed)),
    )(x2, p["Wt"], xa, p["b2"], p["B"])

    out = out[:M, :d_out]
    return out.reshape(*orig_shape[:-1], d_out)


def linear_with_lora(x, W, b, A, B, alpha, rank, *, tm=512, tn=256, tk=2048):
    """Convenience one-shot wrapper (cache `prepare_lora_linear` in real use)."""
    params = prepare_lora_linear(W, b, A, B, alpha, rank, tn=tn, tk=tk)
    return lora_linear_apply(x, params, tm=tm)


def _run_case(key, *, batch, seq, d_in, d_out, rank, alpha, tm, tn, tk):
    kx, kw, kb, ka, kbb = jax.random.split(key, 5)
    x = jax.random.normal(kx, (batch, seq, d_in), dtype=jnp.float32)
    # torch.nn.Linear params: weight (d_out, d_in), bias (d_out,)
    W = jax.random.normal(kw, (d_out, d_in), dtype=jnp.float32) * 0.05
    b = jax.random.normal(kb, (d_out,), dtype=jnp.float32) * 0.05
    # torch inits LoRA B to zeros; use small nonzero values so the path is exercised.
    A = jax.random.normal(ka, (d_in, rank), dtype=jnp.float32) * 0.01
    B = jax.random.normal(kbb, (rank, d_out), dtype=jnp.float32) * 0.01

    params = prepare_lora_linear(W, b, A, B, alpha, rank, tn=tn, tk=tk)
    z = lora_linear_apply(x, params, tm=tm)
    z = jax.block_until_ready(z)

    # Pure-JAX reference (matches the PyTorch forward).
    z_ref = x @ W.T + b + x @ ((A @ B) * (alpha / rank))
    assert z.shape == z_ref.shape
    err = jnp.max(jnp.abs(z - z_ref))
    assert jnp.allclose(z, z_ref, atol=1e-4, rtol=1e-4), f"mismatch, max|diff|={err}"


if __name__ == "__main__":
    key = jax.random.PRNGKey(0)
    k1, k2 = jax.random.split(key)
    # Case 1: small shapes consistent with the module (single K step).
    _run_case(k1, batch=2, seq=8, d_in=32, d_out=64, rank=4, alpha=8.0,
              tm=256, tn=256, tk=2048)
    # Case 2: exercises M/N/K zero-padding and the multi-step K accumulator.
    _run_case(k2, batch=3, seq=5, d_in=300, d_out=200, rank=4, alpha=16.0,
              tm=8, tn=128, tk=128)
    print("KERNEL_OK")
</pallas_src>

<mosaic_0001>
module attributes {stable_mosaic.version = 11 : i64} {
  func.func @_lora_linear_kernel(%arg0: i32, %arg1: i32, %arg2: i32, %arg3: memref<16x32xf32, #tpu.memory_space<vmem>>, %arg4: memref<32x128xf32, #tpu.memory_space<vmem>>, %arg5: memref<16x4xf32, #tpu.memory_space<vmem>>, %arg6: memref<1x128xf32, #tpu.memory_space<vmem>>, %arg7: memref<4x128xf32, #tpu.memory_space<vmem>>, %arg8: memref<16x128xf32, #tpu.memory_space<vmem>>, %arg9: memref<16x128xf32, #tpu.memory_space<vmem>>) attributes {dimension_semantics = [#tpu.dimension_semantics<parallel>, #tpu.dimension_semantics<parallel>, #tpu.dimension_semantics<arbitrary>], iteration_bounds = array<i64: 1, 1, 1>, scalar_prefetch = 0 : i64, scratch_operands = 1 : i64, tpu.core_type = #tpu.core_type<tc>, window_params = [{transform_indices = @transform_0, window_bounds = array<i64: 16, 32>}, {transform_indices = @transform_1, window_bounds = array<i64: 32, 128>}, {transform_indices = @transform_2, window_bounds = array<i64: 16, 4>}, {transform_indices = @transform_3, window_bounds = array<i64: 1, 128>}, {transform_indices = @transform_4, window_bounds = array<i64: 4, 128>}, {transform_indices = @transform_5, window_bounds = array<i64: 16, 128>}]} {
    %c0_i32 = arith.constant 0 : i32
    %0 = arith.cmpi eq, %arg2, %c0_i32 : i32
    %1 = arith.extui %0 : i1 to i32
    %c0_i32_0 = arith.constant 0 : i32
    %2 = arith.cmpi ne, %1, %c0_i32_0 : i32
    scf.if %2 {
      %cst_10 = arith.constant 0.000000e+00 : f32
      %12 = vector.broadcast %cst_10 : f32 to vector<16x128xf32>
      %c0_11 = arith.constant 0 : index
      %c0_12 = arith.constant 0 : index
      %13 = vector.load %arg9[%c0_11, %c0_12] : memref<16x128xf32, #tpu.memory_space<vmem>>, vector<16x128xf32>
      tpu.vector_store %arg9[%c0_11, %c0_12], %12 {strides = array<i32>} : memref<16x128xf32, #tpu.memory_space<vmem>>, vector<16x128xf32>,
    } else {
    }
    %c0 = arith.constant 0 : index
    %c0_1 = arith.constant 0 : index
    %3 = vector.load %arg9[%c0, %c0_1] : memref<16x128xf32, #tpu.memory_space<vmem>>, vector<16x128xf32>
    %c0_2 = arith.constant 0 : index
    %c0_3 = arith.constant 0 : index
    %4 = vector.load %arg3[%c0_2, %c0_3] : memref<16x32xf32, #tpu.memory_space<vmem>>, vector<16x32xf32>
    %c0_4 = arith.constant 0 : index
    %c0_5 = arith.constant 0 : index
    %5 = vector.load %arg4[%c0_4, %c0_5] : memref<32x128xf32, #tpu.memory_space<vmem>>, vector<32x128xf32>
    %cst = arith.constant dense<0.000000e+00> : vector<16x128xf32>
    %6 = tpu.matmul %4, %5, %cst {dimension_numbers = #tpu.dot_dimension_numbers<[1], [0], [0], [1], [0, 0, 1, 1], [], []>} : vector<16x32xf32>, vector<32x128xf32>, vector<16x128xf32> -> vector<16x128xf32>
    %7 = arith.addf %3, %6 : vector<16x128xf32>
    %c0_6 = arith.constant 0 : index
    %c0_7 = arith.constant 0 : index
    %8 = vector.load %arg9[%c0_6, %c0_7] : memref<16x128xf32, #tpu.memory_space<vmem>>, vector<16x128xf32>
    tpu.vector_store %arg9[%c0_6, %c0_7], %7 {strides = array<i32>} : memref<16x128xf32, #tpu.memory_space<vmem>>, vector<16x128xf32>,
    %c0_i32_8 = arith.constant 0 : i32
    %9 = arith.cmpi eq, %arg2, %c0_i32_8 : i32
    %10 = arith.extui %9 : i1 to i32
    %c0_i32_9 = arith.constant 0 : i32
    %11 = arith.cmpi ne, %10, %c0_i32_9 : i32
    scf.if %11 {
      %c0_10 = arith.constant 0 : index
      %c0_11 = arith.constant 0 : index
      %12 = vector.load %arg9[%c0_10, %c0_11] : memref<16x128xf32, #tpu.memory_space<vmem>>, vector<16x128xf32>
      %c0_12 = arith.constant 0 : index
      %c0_13 = arith.constant 0 : index
      %13 = vector.load %arg6[%c0_12, %c0_13] : memref<1x128xf32, #tpu.memory_space<vmem>>, vector<1x128xf32>
      %14 = vector.broadcast %13 : vector<1x128xf32> to vector<16x128xf32>
      %15 = arith.addf %12, %14 : vector<16x128xf32>
      %c0_14 = arith.constant 0 : index
      %c0_15 = arith.constant 0 : index
      %16 = vector.load %arg5[%c0_14, %c0_15] : memref<16x4xf32, #tpu.memory_space<vmem>>, vector<16x4xf32>
      %c0_16 = arith.constant 0 : index
      %c0_17 = arith.constant 0 : index
      %17 = vector.load %arg7[%c0_16, %c0_17] : memref<4x128xf32, #tpu.memory_space<vmem>>, vector<4x128xf32>
      %cst_18 = arith.constant dense<0.000000e+00> : vector<16x128xf32>
      %18 = tpu.matmul %16, %17, %cst_18 {dimension_numbers = #tpu.dot_dimension_numbers<[1], [0], [0], [1], [0, 0, 1, 1], [], []>} : vector<16x4xf32>, vector<4x128xf32>, vector<16x128xf32> -> vector<16x128xf32>
      %19 = arith.addf %15, %18 : vector<16x128xf32>
      %c0_19 = arith.constant 0 : index
      %c0_20 = arith.constant 0 : index
      %20 = vector.load %arg8[%c0_19, %c0_20] : memref<16x128xf32, #tpu.memory_space<vmem>>, vector<16x128xf32>
      tpu.vector_store %arg8[%c0_19, %c0_20], %19 {strides = array<i32>} : memref<16x128xf32, #tpu.memory_space<vmem>>, vector<16x128xf32>,
    } else {
    }
    return
  }
  func.func @transform_0(%arg0: i32, %arg1: i32, %arg2: i32) -> (i32, i32) {
    %c0_i32 = arith.constant 0 : i32
    return %arg0, %arg2 : i32, i32
  }
  func.func @transform_1(%arg0: i32, %arg1: i32, %arg2: i32) -> (i32, i32) {
    %c0_i32 = arith.constant 0 : i32
    return %arg2, %arg1 : i32, i32
  }
  func.func @transform_2(%arg0: i32, %arg1: i32, %arg2: i32) -> (i32, i32) {
    %c0_i32 = arith.constant 0 : i32
    %c0_i32_0 = arith.constant 0 : i32
    return %arg0, %c0_i32 : i32, i32
  }
  func.func @transform_3(%arg0: i32, %arg1: i32, %arg2: i32) -> (i32, i32) {
    %c0_i32 = arith.constant 0 : i32
    %c0_i32_0 = arith.constant 0 : i32
    return %c0_i32, %arg1 : i32, i32
  }
  func.func @transform_4(%arg0: i32, %arg1: i32, %arg2: i32) -> (i32, i32) {
    %c0_i32 = arith.constant 0 : i32
    %c0_i32_0 = arith.constant 0 : i32
    return %c0_i32, %arg1 : i32, i32
  }
  func.func @transform_5(%arg0: i32, %arg1: i32, %arg2: i32) -> (i32, i32) {
    %c0_i32 = arith.constant 0 : i32
    return %arg0, %arg1 : i32, i32
  }
}

</mosaic_0001>

<bundles_post_ra>
// kernel: tpu_custom_call.1
= control target key start
LH: loop header
LB: loop body
LE: loop exit
PB: predicated region body
PF: predicated region fallthrough
CT: control target
= control target key end

     0   :  { %10 = vsyncpa [#allocation4], 0  ;;  %s406_s0 = inlined_call_operand.vmem [shape: f32[16,32], index: 0, kind: input, shape index: {}]   ;;  %s407_s1 = inlined_call_operand.hbm [shape: f32[32,128], index: 1, kind: input, shape index: {}]   ;;  %s408_s2 = inlined_call_operand.vmem [shape: f32[16,4], index: 2, kind: input, shape index: {}]   ;;  %s409_s3 = inlined_call_operand.vmem [shape: f32[1,128], index: 3, kind: input, shape index: {}]   ;;  %s410_s4 = inlined_call_operand.vmem [shape: f32[4,128], index: 4, kind: input, shape index: {}]   ;;  %s411_s5 = inlined_call_operand.hbm [shape: f32[16,128], index: 5, kind: output, shape index: {}]  }
   0x1   :  { %11 = vsyncpa [#allocation5], 0  ;;  %s338_s18 = smov [#allocation3]  }
   0x2   :  { %s19_s19 = sshll.u32 %s338_s18, 4  ;;  %s20_s19 = int_to_ptr.vmem [resolvable:$true] %s19_s19 }
   0x3   :  { %s302_s20 = scalar_lea.vmem %s20_s19, 512  ;;  %p307_p1 = scmp.lt.s32.totalorder %s20_s19, %s20_s19 }
   0x4   :  { %p303_p0 = scmp.ne.s32.totalorder %s20_s19, %s302_s20  ;;  %p308_p2 = scmp.lt.s32.totalorder %s302_s20, %s302_s20 }
   0x6   :  { %p309_p3 = por %p308_p2, %p307_p1 }
   0x8   :  { %p310_p4 = pnand %p309_p3, %p303_p0 }
   0xa   :  { %313 = shalt.err (!%p310_p4)
}
   0xb   :  { %s339_s21 = smov 128   ;;  %s340_s22 = smov 8  }
   0xc   :  { %25 = dma.hbm_to_vmem [thread:$0]  %s407_s1, 512, %s20_s19, [#allocation4], %s339_s21, %s339_s21, %s340_s22  }
   0xd   :  { %334 = dma.done.wait [#allocation4], 512  }
   0xe   :  { %335 = vsyncadd [#allocation4], 4294966784  ;;  %vm159_vm0 = vcmask 1043456   ;;  %v48_v0 = vld [vmem:[#allocation3 + $0x18] sm:$0xff]  ;;  %v47_v1 = vld [vmem:[#allocation3 + $0x10] sm:$0xff]  ;;  %vm49_vm1 = vcmask 261120  }
   0xf   :  { %274 = vmatprep.subr.mxu0 %v48_v0  ;;  %v151_v2 = vld [vmem:[%s410_s4] sm:$0xf]  ;;  %v46_v4 = vld [vmem:[#allocation3 + $0x8] sm:$0xff]  ;;  %vm152_vm2 = vcmask 31744  }
  0x10   :  { %v43_v3 = vld [vmem:[%s406_s0] sm:$0xff]  ;;  %275 = vmatpush3.msra.mxu0 %v48_v0  ;;  %285 = vmatprep.subr.msk.mxu1 %vm159_vm0, %v151_v2  ;;  %v150_v6 = vld [vmem:[%s408_s2 + $0x8] sm:$0xff] }
  0x11   :  { %v149_v5 = vld [vmem:[%s408_s2] sm:$0xff]  ;;  %276 = vmatprep.subr.mxu0 %v47_v1  ;;  %282 = vmatprep.mubr.msk.f32.mxu0 %vm49_vm1, %v43_v3  ;;  %v44_v8 = vld [vmem:[%s406_s0 + $0x8] sm:$0xff]  ;;  %s341_s2 = smov [#allocation6]  }
  0x12   :  { %277 = vmatpush3.msra.mxu0 %v47_v1  ;;  %v45_v7 = vld [vmem:[#allocation3] sm:$0xff]  ;;  %286 = vmatpush3.msk.msra.mxu1 %vm159_vm0, %v151_v2  ;;  %s247_s10 = sshll.u32 %s341_s2, 4  ;;  %s248_s10 = int_to_ptr.vmem [resolvable:$true] %s247_s10 }
  0x13   :  { %278 = vmatprep.subr.mxu0 %v46_v4  ;;  %287 = vmatprep.mubr.msk.f32.mxu1 %vm152_vm2, %v149_v5  ;;  %v261_v9 = vld [vmem:[%s409_s3] ss:$0 sm:$0xff]  ;;  %s314_s0 = scalar_lea.vmem %s248_s10, 256  ;;  %p319_p6 = scmp.lt.s32.totalorder %s248_s10, %s248_s10 }
  0x14   :  { %279 = vmatpush3.msra.mxu0 %v46_v4  ;;  %288 = vmatmul.mubr.msk.f32.vlgmr.msra.gmra.mxu1 %vm152_vm2, %v150_v6  ;;  %p315_p5 = scmp.ne.s32.totalorder %s248_s10, %s314_s0  ;;  %p320_p7 = scmp.lt.s32.totalorder %s314_s0, %s314_s0 }
  0x15   :  { %280 = vmatprep.subr.mxu0 %v45_v7 }
  0x16   :  { %281 = vmatpush3.msra.mxu0 %v45_v7  ;;  %p321_p8 = por %p320_p7, %p319_p6 }
  0x17   :  { %283 = vmatmul.mubr.msk.f32.vlgmr.msra.gmra.mxu0 %vm49_vm1, %v44_v8 }
  0x18   :  { %p322_p9 = pnand %p321_p8, %p315_p5 }
  0xd4   :  { %v289_v11 = vpop.f32.mrf.mxu1 }
  0xd6   :  { %v229_v16 = vpop.f32.mrf.mxu1 }
  0xd7   :  { %v284_v10 = vpop.f32.mrf.mxu0 }
  0xd8   :  { %v148_v12 = vadd.f32 %v284_v10, %v261_v9 }
  0xd9   :  { %v122_v13 = vpop.f32.mrf.mxu0 }
  0xda   :  { %v239_v14 = vadd.f32 %v289_v11, %v148_v12  ;;  %v147_v15 = vadd.f32 %v261_v9, %v122_v13 }
  0xdc   :  { %241 = vst [vmem:[#allocation6 + $0x8] sm:$0xff] %v239_v14  ;;  %v238_v17 = vadd.f32 %v229_v16, %v147_v15 }
  0xde   :  { %240 = vst [vmem:[#allocation6] sm:$0xff] %v238_v17 }
  0xdf   :  { %325 = shalt.err (!%p322_p9)
}
  0xe0   :  { %253 = dma.vmem_to_hbm [thread:$0]  %s248_s10, 256, %s411_s5, [#allocation5], %s339_s21, %s339_s21, %s340_s22  }
  0xe1   :  { %336 = dma.done.wait [#allocation5], 256  }
  0xe2   :  { %337 = vsyncadd [#allocation5], 4294967040 }
  0xe3   :  { %257 = vsyncpa [#allocation4], 1 }
  0xe4   :  { %258 = vsyncpa [#allocation5], 1 }

</bundles_post_ra>
